<compile_context>
chip_gen: v7x
topology: tpu7x:2x2x1
jax: 0.10.0
libtpu: 0.0.40
codegen_flags: <defaults>
</compile_context>

<pallas_src>
import jax
import jax.numpy as jnp
from jax.experimental import pallas as pl
from jax.experimental.pallas import tpu as pltpu


# ----------------------------------------------------------------------------
# Pallas kernel: transpose the last two dims of one tile.
#   batch path : (b_blk, HW, C)  -> (b_blk, C, HW)
#   HW-tiled   : (1, t_hw, C)    -> (1, C, t_hw)
# ----------------------------------------------------------------------------
def _transpose_last2_kernel(x_ref, o_ref):
    o_ref[...] = jnp.swapaxes(x_ref[...], 1, 2)


# ----------------------------------------------------------------------------
# VMEM footprint accounting (includes lane/sublane padding)
# ----------------------------------------------------------------------------
_SUBLANES_BY_ITEMSIZE = {4: 8, 2: 16, 1: 32}


def _round_up(x, m):
    return ((x + m - 1) // m) * m


def _padded_tile_bytes(b_blk, hw, c, itemsize):
    """Padded VMEM bytes of one input tile + one output tile (no buffering)."""
    sub = _SUBLANES_BY_ITEMSIZE.get(itemsize, 8)
    # input tile (b_blk, hw, c): hw on sublanes, c on lanes (padded to 128)
    in_bytes = b_blk * _round_up(hw, sub) * _round_up(c, 128) * itemsize
    # output tile (b_blk, c, hw): c on sublanes, hw on lanes
    out_bytes = b_blk * _round_up(c, sub) * _round_up(hw, 128) * itemsize
    return in_bytes + out_bytes


# ----------------------------------------------------------------------------
# Chip introspection (best effort, conservative fallbacks)
# ----------------------------------------------------------------------------
def _chip_info():
    num_tc = 1
    vmem_cap = 64 << 20  # conservative default (v7x per-TC VMEM)
    try:
        info = pltpu.get_tpu_info()
        vmem_cap = int(getattr(info, "vmem_capacity_bytes", vmem_cap))
        for attr in ("num_tensorcores", "tensorcores_per_chip", "num_cores"):
            v = getattr(info, attr, None)
            if v:
                num_tc = int(v)
                break
    except Exception:
        pass
    if num_tc == 1:
        # Heuristic: v7x-class parts have 2 TCs per chip.
        try:
            kind = jax.devices()[0].device_kind.lower()
            if "7" in kind:
                num_tc = 2
        except Exception:
            pass
    return num_tc, vmem_cap


# ----------------------------------------------------------------------------
# Tiling heuristics
# ----------------------------------------------------------------------------
_TINY_BYTES = 2 << 20  # below this, one grid step beats any parallelism


def _choose_batch_block(B, HW, C, itemsize, budget, num_tc):
    """Batch block size, or None if even one batch slab exceeds the budget."""
    per_b = 2 * _padded_tile_bytes(1, HW, C, itemsize)  # double-buffered
    if per_b > budget:
        return None  # fall back to HW tiling
    max_blk = max(1, budget // per_b)
    total = 2 * _padded_tile_bytes(B, HW, C, itemsize)
    if num_tc > 1 and total > _TINY_BYTES:
        # Keep ~2 steps per TensorCore so the "parallel" axis can shard
        # across both cores on v7x-class parts. Single-TC chips skip this.
        max_blk = min(max_blk, max(1, pl.cdiv(B, 2 * num_tc)))
    return max(1, min(B, max_blk))


def _choose_hw_block(HW, C, itemsize, budget):
    """Largest t_hw (multiple of 128) whose double-buffered tiles fit budget."""
    per_chunk = 2 * _padded_tile_bytes(1, 128, C, itemsize)  # linear in chunks
    n_chunks = max(1, budget // per_chunk)
    return int(min(128 * n_chunks, _round_up(HW, 128)))


# ----------------------------------------------------------------------------
# Wrapper
# ----------------------------------------------------------------------------
def patch_unembed_pallas(x, x_size, dim, *, vmem_budget_bytes=None):
    """x: (B, HW, C) -> (B, dim, H, W), matching PatchUnEmbed.forward."""
    B, HW, C = x.shape
    H, W = x_size
    assert C == dim, f"channel dim {C} != module dim {dim}"
    assert HW == H * W, f"HW {HW} != H*W {H * W}"

    itemsize = jnp.dtype(x.dtype).itemsize
    num_tc, vmem_cap = _chip_info()
    if vmem_budget_bytes is not None:
        budget = int(vmem_budget_bytes)
    else:
        # 128 MiB parts (v5e/v6e): ~28 MiB of pipeline buffers;
        # 64 MiB parts (v7x): ~20 MiB.
        budget = (28 << 20) if vmem_cap >= (96 << 20) else (20 << 20)

    b_blk = _choose_batch_block(B, HW, C, itemsize, budget, num_tc)

    if b_blk is not None:
        # Batch-blocked path: full (HW, C) slabs, ragged last block masked.
        grid = (pl.cdiv(B, b_blk),)
        in_specs = [pl.BlockSpec((b_blk, HW, C), lambda b: (b, 0, 0))]
        out_specs = pl.BlockSpec((b_blk, C, HW), lambda b: (b, 0, 0))
        used = 2 * _padded_tile_bytes(b_blk, HW, C, itemsize)
        dims = ("parallel",)
    else:
        # HW-tiled fallback for large images: t_hw multiple of 128 keeps the
        # output lane-dense (unmasked vst) and satisfies the (8,128) rule.
        t_hw = _choose_hw_block(HW, C, itemsize, budget)
        grid = (B, pl.cdiv(HW, t_hw))
        in_specs = [pl.BlockSpec((1, t_hw, C), lambda b, i: (b, i, 0))]
        out_specs = pl.BlockSpec((1, C, t_hw), lambda b, i: (b, 0, i))
        used = 2 * _padded_tile_bytes(1, t_hw, C, itemsize)
        dims = ("parallel", "parallel")

    # Explicit scoped-VMEM limit: what we use + headroom, clamped below the
    # physical capacity of the chip generation we detected.
    vmem_limit = int(max(32 << 20, min(used + (8 << 20), (vmem_cap * 3) // 4)))

    out = pl.pallas_call(
        _transpose_last2_kernel,
        out_shape=jax.ShapeDtypeStruct((B, C, HW), x.dtype),
        grid_spec=pltpu.PrefetchScalarGridSpec(
            num_scalar_prefetch=0,
            grid=grid,
            in_specs=in_specs,
            out_specs=out_specs,
        ),
        compiler_params=pltpu.CompilerParams(
            dimension_semantics=dims,
            vmem_limit_bytes=vmem_limit,
        ),
    )(x)

    # Contiguous reshape (free): (B, C, HW) -> (B, C, H, W)
    return out.reshape(B, C, H, W)


# ----------------------------------------------------------------------------
# Pure-JAX reference (mirrors the PyTorch forward)
# ----------------------------------------------------------------------------
def patch_unembed_ref(x, x_size, dim):
    B, HW, C = x.shape
    return jnp.transpose(x, (0, 2, 1)).reshape(B, dim, x_size[0], x_size[1])


if __name__ == "__main__":
    key = jax.random.PRNGKey(0)

    # --- Main check: module-default shapes (B=2, 16x16 tokens, dim=96) -----
    dim = 96
    x_size = (16, 16)
    B = 2
    HW = x_size[0] * x_size[1]
    x = jax.random.normal(key, (B, HW, dim), dtype=jnp.float32)

    y = patch_unembed_pallas(x, x_size, dim)
    y = jax.block_until_ready(y)
    y_ref = patch_unembed_ref(x, x_size, dim)
    assert y.shape == (B, dim, x_size[0], x_size[1])
    assert jnp.array_equal(y, y_ref), "mismatch vs reference (batch path)"

    # --- Exercise ragged cdiv batch blocking (forced tiny budget) ----------
    k2 = jax.random.PRNGKey(1)
    x2 = jax.random.normal(k2, (3, 256, dim), dtype=jnp.float32)
    y2 = jax.block_until_ready(
        patch_unembed_pallas(x2, (16, 16), dim, vmem_budget_bytes=1 << 20))
    assert jnp.array_equal(y2, patch_unembed_ref(x2, (16, 16), dim)), \
        "mismatch vs reference (ragged batch path)"

    # --- Exercise the HW-tiling fallback (forced tiny budget) --------------
    k3 = jax.random.PRNGKey(2)
    x3 = jax.random.normal(k3, (1, 1024, dim), dtype=jnp.float32)
    y3 = jax.block_until_ready(
        patch_unembed_pallas(x3, (32, 32), dim, vmem_budget_bytes=1 << 20))
    assert jnp.array_equal(y3, patch_unembed_ref(x3, (32, 32), dim)), \
        "mismatch vs reference (HW-tiled path)"

    print("KERNEL_OK")
</pallas_src>

<mosaic_0001>
module attributes {stable_mosaic.version = 11 : i64} {
  func.func @_transpose_last2_kernel(%arg0: i32, %arg1: memref<2x256x96xf32, #tpu.memory_space<vmem>>, %arg2: memref<2x96x256xf32, #tpu.memory_space<vmem>>) attributes {dimension_semantics = [#tpu.dimension_semantics<parallel>], iteration_bounds = array<i64: 1>, scalar_prefetch = 0 : i64, scratch_operands = 0 : i64, tpu.core_type = #tpu.core_type<tc>, window_params = [{transform_indices = @transform_0, window_bounds = array<i64: 2, 256, 96>}, {transform_indices = @transform_1, window_bounds = array<i64: 2, 96, 256>}]} {
    %c0 = arith.constant 0 : index
    %c0_0 = arith.constant 0 : index
    %c0_1 = arith.constant 0 : index
    %0 = vector.load %arg1[%c0, %c0_0, %c0_1] : memref<2x256x96xf32, #tpu.memory_space<vmem>>, vector<2x256x96xf32>
    %1 = tpu.transpose %0, [0, 2, 1] : vector<2x256x96xf32> -> vector<2x96x256xf32>
    %c0_2 = arith.constant 0 : index
    %c0_3 = arith.constant 0 : index
    %c0_4 = arith.constant 0 : index
    %2 = vector.load %arg2[%c0_2, %c0_3, %c0_4] : memref<2x96x256xf32, #tpu.memory_space<vmem>>, vector<2x96x256xf32>
    tpu.vector_store %arg2[%c0_2, %c0_3, %c0_4], %1 {strides = array<i32>} : memref<2x96x256xf32, #tpu.memory_space<vmem>>, vector<2x96x256xf32>,
    return
  }
  func.func @transform_0(%arg0: i32) -> (i32, i32, i32) {
    %c0_i32 = arith.constant 0 : i32
    %c0_i32_0 = arith.constant 0 : i32
    %c0_i32_1 = arith.constant 0 : i32
    return %arg0, %c0_i32, %c0_i32_0 : i32, i32, i32
  }
  func.func @transform_1(%arg0: i32) -> (i32, i32, i32) {
    %c0_i32 = arith.constant 0 : i32
    %c0_i32_0 = arith.constant 0 : i32
    %c0_i32_1 = arith.constant 0 : i32
    return %arg0, %c0_i32, %c0_i32_0 : i32, i32, i32
  }
}

</mosaic_0001>

<bundles_post_ra>
// kernel: tpu_custom_call.1
= control target key start
LH: loop header
LB: loop body
LE: loop exit
PB: predicated region body
PF: predicated region fallthrough
CT: control target
= control target key end

     0   :  { %s509_s0 = inlined_call_operand.vmem [shape: f32[2,256,96], index: 0, kind: input, shape index: {}]   ;;  %s510_s1 = inlined_call_operand.hbm [shape: f32[2,96,256], index: 1, kind: output, shape index: {}]  }
   0x1   :  { %v25_v0 = vld [vmem:[%s509_s0 + $0x80] sm:$0xff]  ;;  %v26_v2 = vld [vmem:[%s509_s0 + $0x88] sm:$0xff]  ;;  %v27_v4 = vld [vmem:[%s509_s0 + $0x90] sm:$0xff] }
   0x2   :  { %v9_v1 = vld [vmem:[%s509_s0] sm:$0xff]  ;;  %105 = vxpose.xlu1.b32.start [1/16] (narrow) %v25_v0, 96  ;;  %v10_v3 = vld [vmem:[%s509_s0 + $0x8] sm:$0xff]  ;;  %v11_v5 = vld [vmem:[%s509_s0 + $0x10] sm:$0xff] }
   0x3   :  { %73 = vxpose.xlu0.b32.start [1/16] (narrow) %v9_v1, 96  ;;  %v28_v6 = vld [vmem:[%s509_s0 + $0x98] sm:$0xff]  ;;  %v29_v8 = vld [vmem:[%s509_s0 + $0xa0] sm:$0xff]  ;;  %v30_v10 = vld [vmem:[%s509_s0 + $0xa8] sm:$0xff] }
   0x4   :  { %v12_v7 = vld [vmem:[%s509_s0 + $0x18] sm:$0xff]  ;;  %v13_v9 = vld [vmem:[%s509_s0 + $0x20] sm:$0xff]  ;;  %v14_v11 = vld [vmem:[%s509_s0 + $0x28] sm:$0xff] }
   0x6   :  { %106 = vxpose.xlu1.b32.cont [2/16] (narrow) %v26_v2, 96 }
   0x7   :  { %74 = vxpose.xlu0.b32.cont [2/16] (narrow) %v10_v3, 96 }
   0xa   :  { %107 = vxpose.xlu1.b32.cont [3/16] (narrow) %v27_v4, 96 }
   0xb   :  { %75 = vxpose.xlu0.b32.cont [3/16] (narrow) %v11_v5, 96 }
   0xe   :  { %108 = vxpose.xlu1.b32.cont [4/16] (narrow) %v28_v6, 96 }
   0xf   :  { %76 = vxpose.xlu0.b32.cont [4/16] (narrow) %v12_v7, 96 }
  0x12   :  { %109 = vxpose.xlu1.b32.cont [5/16] (narrow) %v29_v8, 96 }
  0x13   :  { %77 = vxpose.xlu0.b32.cont [5/16] (narrow) %v13_v9, 96 }
  0x16   :  { %110 = vxpose.xlu1.b32.cont [6/16] (narrow) %v30_v10, 96 }
  0x17   :  { %78 = vxpose.xlu0.b32.cont [6/16] (narrow) %v14_v11, 96 }
  0x18   :  { %6 = vsyncpa [#allocation3], 0  ;;  %v31_v12 = vld [vmem:[%s509_s0 + $0xb0] sm:$0xff]  ;;  %v32_v14 = vld [vmem:[%s509_s0 + $0xb8] sm:$0xff] }
  0x19   :  { %v15_v13 = vld [vmem:[%s509_s0 + $0x30] sm:$0xff]  ;;  %v16_v15 = vld [vmem:[%s509_s0 + $0x38] sm:$0xff]  ;;  %v33_v16 = vld [vmem:[%s509_s0 + $0xc0] sm:$0xff] }
  0x1a   :  { %111 = vxpose.xlu1.b32.cont [7/16] (narrow) %v31_v12, 96  ;;  %v17_v17 = vld [vmem:[%s509_s0 + $0x40] sm:$0xff]  ;;  %v34_v18 = vld [vmem:[%s509_s0 + $0xc8] sm:$0xff]  ;;  %v35_v20 = vld [vmem:[%s509_s0 + $0xd0] sm:$0xff] }
  0x1b   :  { %79 = vxpose.xlu0.b32.cont [7/16] (narrow) %v15_v13, 96  ;;  %v18_v19 = vld [vmem:[%s509_s0 + $0x48] sm:$0xff]  ;;  %v19_v21 = vld [vmem:[%s509_s0 + $0x50] sm:$0xff]  ;;  %v36_v22 = vld [vmem:[%s509_s0 + $0xd8] sm:$0xff] }
  0x1c   :  { %v20_v23 = vld [vmem:[%s509_s0 + $0x58] sm:$0xff]  ;;  %v37_v24 = vld [vmem:[%s509_s0 + $0xe0] sm:$0xff]  ;;  %v38_v26 = vld [vmem:[%s509_s0 + $0xe8] sm:$0xff] }
  0x1d   :  { %v21_v25 = vld [vmem:[%s509_s0 + $0x60] sm:$0xff]  ;;  %v22_v27 = vld [vmem:[%s509_s0 + $0x68] sm:$0xff]  ;;  %v39_v28 = vld [vmem:[%s509_s0 + $0xf0] sm:$0xff] }
  0x1e   :  { %112 = vxpose.xlu1.b32.cont [8/16] (narrow) %v32_v14, 96  ;;  %v23_v29 = vld [vmem:[%s509_s0 + $0x70] sm:$0xff]  ;;  %v40_v30 = vld [vmem:[%s509_s0 + $0xf8] sm:$0xff]  ;;  %v57_v32 = vld [vmem:[%s509_s0 + $0x180] sm:$0xff] }
  0x1f   :  { %80 = vxpose.xlu0.b32.cont [8/16] (narrow) %v16_v15, 96  ;;  %v24_v31 = vld [vmem:[%s509_s0 + $0x78] sm:$0xff]  ;;  %v41_v33 = vld [vmem:[%s509_s0 + $0x100] sm:$0xff]  ;;  %v58_v34 = vld [vmem:[%s509_s0 + $0x188] sm:$0xff] }
  0x20   :  { %v42_v35 = vld [vmem:[%s509_s0 + $0x108] sm:$0xff]  ;;  %v59_v36 = vld [vmem:[%s509_s0 + $0x190] sm:$0xff]  ;;  %v60_v38 = vld [vmem:[%s509_s0 + $0x198] sm:$0xff] }
  0x21   :  { %v43_v37 = vld [vmem:[%s509_s0 + $0x110] sm:$0xff]  ;;  %v44_v39 = vld [vmem:[%s509_s0 + $0x118] sm:$0xff]  ;;  %v61_v40 = vld [vmem:[%s509_s0 + $0x1a0] sm:$0xff] }
  0x22   :  { %113 = vxpose.xlu1.b32.cont [9/16] (narrow) %v33_v16, 96  ;;  %v45_v41 = vld [vmem:[%s509_s0 + $0x120] sm:$0xff]  ;;  %v62_v42 = vld [vmem:[%s509_s0 + $0x1a8] sm:$0xff]  ;;  %v63_v44 = vld [vmem:[%s509_s0 + $0x1b0] sm:$0xff] }
  0x23   :  { %81 = vxpose.xlu0.b32.cont [9/16] (narrow) %v17_v17, 96  ;;  %v46_v43 = vld [vmem:[%s509_s0 + $0x128] sm:$0xff]  ;;  %v47_v45 = vld [vmem:[%s509_s0 + $0x130] sm:$0xff]  ;;  %v64_v46 = vld [vmem:[%s509_s0 + $0x1b8] sm:$0xff] }
  0x24   :  { %v48_v47 = vld [vmem:[%s509_s0 + $0x138] sm:$0xff]  ;;  %v65_v48 = vld [vmem:[%s509_s0 + $0x1c0] sm:$0xff]  ;;  %v66_v50 = vld [vmem:[%s509_s0 + $0x1c8] sm:$0xff] }
  0x25   :  { %v49_v49 = vld [vmem:[%s509_s0 + $0x140] sm:$0xff]  ;;  %v50_v51 = vld [vmem:[%s509_s0 + $0x148] sm:$0xff]  ;;  %v67_v52 = vld [vmem:[%s509_s0 + $0x1d0] sm:$0xff] }
  0x26   :  { %114 = vxpose.xlu1.b32.cont [10/16] (narrow) %v34_v18, 96  ;;  %v51_v53 = vld [vmem:[%s509_s0 + $0x150] sm:$0xff]  ;;  %v68_v54 = vld [vmem:[%s509_s0 + $0x1d8] sm:$0xff]  ;;  %v69_v56 = vld [vmem:[%s509_s0 + $0x1e0] sm:$0xff] }
  0x27   :  { %82 = vxpose.xlu0.b32.cont [10/16] (narrow) %v18_v19, 96  ;;  %v52_v55 = vld [vmem:[%s509_s0 + $0x158] sm:$0xff]  ;;  %v53_v57 = vld [vmem:[%s509_s0 + $0x160] sm:$0xff]  ;;  %v70_v58 = vld [vmem:[%s509_s0 + $0x1e8] sm:$0xff] }
  0x28   :  { %v54_v59 = vld [vmem:[%s509_s0 + $0x168] sm:$0xff]  ;;  %v71_v60 = vld [vmem:[%s509_s0 + $0x1f0] sm:$0xff]  ;;  %v72_v62 = vld [vmem:[%s509_s0 + $0x1f8] sm:$0xff] }
  0x29   :  { %v55_v61 = vld [vmem:[%s509_s0 + $0x170] sm:$0xff]  ;;  %v56_v63 = vld [vmem:[%s509_s0 + $0x178] sm:$0xff]  ;;  %s292_s0 = smov [#allocation2]  }
  0x2a   :  { %115 = vxpose.xlu1.b32.cont [11/16] (narrow) %v35_v20, 96  ;;  %s254_s18 = sshll.u32 %s292_s0, 4  ;;  %s255_s18 = int_to_ptr.vmem [resolvable:$true] %s254_s18 }
  0x2b   :  { %83 = vxpose.xlu0.b32.cont [11/16] (narrow) %v19_v21, 96  ;;  %s268_s19 = scalar_lea.vmem %s255_s18, 6144  ;;  %p273_p1 = scmp.lt.s32.totalorder %s255_s18, %s255_s18 }
  0x2c   :  { %p269_p0 = scmp.ne.s32.totalorder %s255_s18, %s268_s19  ;;  %p274_p2 = scmp.lt.s32.totalorder %s268_s19, %s268_s19 }
  0x2e   :  { %116 = vxpose.xlu1.b32.cont [12/16] (narrow) %v36_v22, 96  ;;  %p275_p3 = por %p274_p2, %p273_p1 }
  0x2f   :  { %84 = vxpose.xlu0.b32.cont [12/16] (narrow) %v20_v23, 96 }
  0x30   :  { %p276_p4 = pnand %p275_p3, %p269_p0 }
  0x32   :  { %117 = vxpose.xlu1.b32.cont [13/16] (narrow) %v37_v24, 96 }
  0x33   :  { %85 = vxpose.xlu0.b32.cont [13/16] (narrow) %v21_v25, 96 }
  0x36   :  { %118 = vxpose.xlu1.b32.cont [14/16] (narrow) %v38_v26, 96 }
  0x37   :  { %86 = vxpose.xlu0.b32.cont [14/16] (narrow) %v22_v27, 96 }
  0x3a   :  { %119 = vxpose.xlu1.b32.cont [15/16] (narrow) %v39_v28, 96 }
  0x3b   :  { %87 = vxpose.xlu0.b32.cont [15/16] (narrow) %v23_v29, 96 }
  0x3e   :  { %120 = vxpose.xlu1.b32.end [16/16] (narrow) %v40_v30, 96 }
  0x3f   :  { %88 = vxpose.xlu0.b32.end [16/16] (narrow) %v24_v31, 96 }
  0x42   :  { %169 = vxpose.xlu1.b32.start [1/16] (narrow) %v57_v32, 96 }
  0x43   :  { %137 = vxpose.xlu0.b32.start [1/16] (narrow) %v41_v33, 96 }
  0x46   :  { %170 = vxpose.xlu1.b32.cont [2/16] (narrow) %v58_v34, 96 }
  0x47   :  { %138 = vxpose.xlu0.b32.cont [2/16] (narrow) %v42_v35, 96 }
  0x4a   :  { %171 = vxpose.xlu1.b32.cont [3/16] (narrow) %v59_v36, 96 }
  0x4b   :  { %139 = vxpose.xlu0.b32.cont [3/16] (narrow) %v43_v37, 96 }
  0x4e   :  { %172 = vxpose.xlu1.b32.cont [4/16] (narrow) %v60_v38, 96 }
  0x4f   :  { %140 = vxpose.xlu0.b32.cont [4/16] (narrow) %v44_v39, 96 }
  0x52   :  { %173 = vxpose.xlu1.b32.cont [5/16] (narrow) %v61_v40, 96 }
  0x53   :  { %141 = vxpose.xlu0.b32.cont [5/16] (narrow) %v45_v41, 96 }
  0x56   :  { %174 = vxpose.xlu1.b32.cont [6/16] (narrow) %v62_v42, 96 }
  0x57   :  { %142 = vxpose.xlu0.b32.cont [6/16] (narrow) %v46_v43, 96 }
  0x5a   :  { %175 = vxpose.xlu1.b32.cont [7/16] (narrow) %v63_v44, 96 }
  0x5b   :  { %143 = vxpose.xlu0.b32.cont [7/16] (narrow) %v47_v45, 96 }
  0x5e   :  { %176 = vxpose.xlu1.b32.cont [8/16] (narrow) %v64_v46, 96 }
  0x5f   :  { %144 = vxpose.xlu0.b32.cont [8/16] (narrow) %v48_v47, 96 }
  0x62   :  { %177 = vxpose.xlu1.b32.cont [9/16] (narrow) %v65_v48, 96 }
  0x63   :  { %145 = vxpose.xlu0.b32.cont [9/16] (narrow) %v49_v49, 96 }
  0x66   :  { %178 = vxpose.xlu1.b32.cont [10/16] (narrow) %v66_v50, 96 }
  0x67   :  { %146 = vxpose.xlu0.b32.cont [10/16] (narrow) %v50_v51, 96 }
  0x6a   :  { %179 = vxpose.xlu1.b32.cont [11/16] (narrow) %v67_v52, 96 }
  0x6b   :  { %147 = vxpose.xlu0.b32.cont [11/16] (narrow) %v51_v53, 96 }
  0x6e   :  { %180 = vxpose.xlu1.b32.cont [12/16] (narrow) %v68_v54, 96 }
  0x6f   :  { %148 = vxpose.xlu0.b32.cont [12/16] (narrow) %v52_v55, 96 }
  0x72   :  { %181 = vxpose.xlu1.b32.cont [13/16] (narrow) %v69_v56, 96 }
  0x73   :  { %149 = vxpose.xlu0.b32.cont [13/16] (narrow) %v53_v57, 96 }
  0x76   :  { %182 = vxpose.xlu1.b32.cont [14/16] (narrow) %v70_v58, 96 }
  0x77   :  { %150 = vxpose.xlu0.b32.cont [14/16] (narrow) %v54_v59, 96 }
  0x7a   :  { %183 = vxpose.xlu1.b32.cont [15/16] (narrow) %v71_v60, 96 }
  0x7b   :  { %151 = vxpose.xlu0.b32.cont [15/16] (narrow) %v55_v61, 96 }
  0x7e   :  { %184 = vxpose.xlu1.b32.end [16/16] (narrow) %v72_v62, 96 }
  0x7f   :  { %152 = vxpose.xlu0.b32.end [16/16] (narrow) %v56_v63, 96 }
  0x82   :  { %v121_v0 = vpop.trf.xlu1 }
  0x83   :  { %v89_v1 = vpop.trf.xlu0  ;;  %202 = vst [vmem:[#allocation2 + $0x8] sm:$0xff] %v121_v0 }
  0x84   :  { %201 = vst [vmem:[#allocation2] sm:$0xff] %v89_v1 }
  0x86   :  { %v122_v2 = vpop.trf.xlu1 }
  0x87   :  { %v90_v3 = vpop.trf.xlu0  ;;  %204 = vst [vmem:[#allocation2 + $0x18] sm:$0xff] %v122_v2 }
  0x88   :  { %203 = vst [vmem:[#allocation2 + $0x10] sm:$0xff] %v90_v3 }
  0x8a   :  { %v123_v4 = vpop.trf.xlu1 }
  0x8b   :  { %v91_v5 = vpop.trf.xlu0  ;;  %206 = vst [vmem:[#allocation2 + $0x28] sm:$0xff] %v123_v4 }
  0x8c   :  { %205 = vst [vmem:[#allocation2 + $0x20] sm:$0xff] %v91_v5 }
  0x8e   :  { %v124_v6 = vpop.trf.xlu1 }
  0x8f   :  { %v92_v7 = vpop.trf.xlu0  ;;  %208 = vst [vmem:[#allocation2 + $0x38] sm:$0xff] %v124_v6 }
  0x90   :  { %207 = vst [vmem:[#allocation2 + $0x30] sm:$0xff] %v92_v7 }
  0x92   :  { %v125_v8 = vpop.trf.xlu1 }
  0x93   :  { %v93_v9 = vpop.trf.xlu0  ;;  %210 = vst [vmem:[#allocation2 + $0x48] sm:$0xff] %v125_v8 }
  0x94   :  { %209 = vst [vmem:[#allocation2 + $0x40] sm:$0xff] %v93_v9 }
  0x96   :  { %v126_v10 = vpop.trf.xlu1 }
  0x97   :  { %v94_v11 = vpop.trf.xlu0  ;;  %212 = vst [vmem:[#allocation2 + $0x58] sm:$0xff] %v126_v10 }
  0x98   :  { %211 = vst [vmem:[#allocation2 + $0x50] sm:$0xff] %v94_v11 }
  0x9a   :  { %v127_v12 = vpop.trf.xlu1 }
  0x9b   :  { %v95_v13 = vpop.trf.xlu0  ;;  %214 = vst [vmem:[#allocation2 + $0x68] sm:$0xff] %v127_v12 }
  0x9c   :  { %213 = vst [vmem:[#allocation2 + $0x60] sm:$0xff] %v95_v13 }
  0x9e   :  { %v128_v14 = vpop.trf.xlu1 }
  0x9f   :  { %v96_v15 = vpop.trf.xlu0  ;;  %216 = vst [vmem:[#allocation2 + $0x78] sm:$0xff] %v128_v14 }
  0xa0   :  { %215 = vst [vmem:[#allocation2 + $0x70] sm:$0xff] %v96_v15 }
  0xa2   :  { %v129_v16 = vpop.trf.xlu1 }
  0xa3   :  { %v97_v17 = vpop.trf.xlu0  ;;  %218 = vst [vmem:[#allocation2 + $0x88] sm:$0xff] %v129_v16 }
  0xa4   :  { %217 = vst [vmem:[#allocation2 + $0x80] sm:$0xff] %v97_v17 }
  0xa6   :  { %v130_v18 = vpop.trf.xlu1 }
  0xa7   :  { %v98_v19 = vpop.trf.xlu0  ;;  %220 = vst [vmem:[#allocation2 + $0x98] sm:$0xff] %v130_v18 }
  0xa8   :  { %219 = vst [vmem:[#allocation2 + $0x90] sm:$0xff] %v98_v19 }
  0xaa   :  { %v131_v20 = vpop.trf.xlu1 }
  0xab   :  { %v99_v21 = vpop.trf.xlu0  ;;  %222 = vst [vmem:[#allocation2 + $0xa8] sm:$0xff] %v131_v20 }
  0xac   :  { %221 = vst [vmem:[#allocation2 + $0xa0] sm:$0xff] %v99_v21 }
  0xae   :  { %v132_v22 = vpop.trf.xlu1 }
  0xaf   :  { %v100_v23 = vpop.trf.xlu0  ;;  %224 = vst [vmem:[#allocation2 + $0xb8] sm:$0xff] %v132_v22 }
  0xb0   :  { %223 = vst [vmem:[#allocation2 + $0xb0] sm:$0xff] %v100_v23 }
  0xc2   :  { %v185_v24 = vpop.trf.xlu1 }
  0xc3   :  { %v153_v25 = vpop.trf.xlu0  ;;  %226 = vst [vmem:[#allocation2 + $0xc8] sm:$0xff] %v185_v24 }
  0xc4   :  { %225 = vst [vmem:[#allocation2 + $0xc0] sm:$0xff] %v153_v25 }
  0xc6   :  { %v186_v26 = vpop.trf.xlu1 }
  0xc7   :  { %v154_v27 = vpop.trf.xlu0  ;;  %228 = vst [vmem:[#allocation2 + $0xd8] sm:$0xff] %v186_v26 }
  0xc8   :  { %227 = vst [vmem:[#allocation2 + $0xd0] sm:$0xff] %v154_v27 }
  0xca   :  { %v187_v28 = vpop.trf.xlu1 }
  0xcb   :  { %v155_v29 = vpop.trf.xlu0  ;;  %230 = vst [vmem:[#allocation2 + $0xe8] sm:$0xff] %v187_v28 }
  0xcc   :  { %229 = vst [vmem:[#allocation2 + $0xe0] sm:$0xff] %v155_v29 }
  0xce   :  { %v188_v30 = vpop.trf.xlu1 }
  0xcf   :  { %v156_v31 = vpop.trf.xlu0  ;;  %232 = vst [vmem:[#allocation2 + $0xf8] sm:$0xff] %v188_v30 }
  0xd0   :  { %231 = vst [vmem:[#allocation2 + $0xf0] sm:$0xff] %v156_v31 }
  0xd2   :  { %v189_v32 = vpop.trf.xlu1 }
  0xd3   :  { %v157_v33 = vpop.trf.xlu0  ;;  %234 = vst [vmem:[#allocation2 + $0x108] sm:$0xff] %v189_v32 }
  0xd4   :  { %233 = vst [vmem:[#allocation2 + $0x100] sm:$0xff] %v157_v33 }
  0xd6   :  { %v190_v34 = vpop.trf.xlu1 }
  0xd7   :  { %v158_v35 = vpop.trf.xlu0  ;;  %236 = vst [vmem:[#allocation2 + $0x118] sm:$0xff] %v190_v34 }
  0xd8   :  { %235 = vst [vmem:[#allocation2 + $0x110] sm:$0xff] %v158_v35 }
  0xda   :  { %v191_v36 = vpop.trf.xlu1 }
  0xdb   :  { %v159_v37 = vpop.trf.xlu0  ;;  %238 = vst [vmem:[#allocation2 + $0x128] sm:$0xff] %v191_v36 }
  0xdc   :  { %237 = vst [vmem:[#allocation2 + $0x120] sm:$0xff] %v159_v37 }
  0xde   :  { %v192_v38 = vpop.trf.xlu1 }
  0xdf   :  { %v160_v39 = vpop.trf.xlu0  ;;  %240 = vst [vmem:[#allocation2 + $0x138] sm:$0xff] %v192_v38 }
  0xe0   :  { %239 = vst [vmem:[#allocation2 + $0x130] sm:$0xff] %v160_v39 }
  0xe2   :  { %v193_v40 = vpop.trf.xlu1 }
  0xe3   :  { %v161_v41 = vpop.trf.xlu0  ;;  %242 = vst [vmem:[#allocation2 + $0x148] sm:$0xff] %v193_v40 }
  0xe4   :  { %241 = vst [vmem:[#allocation2 + $0x140] sm:$0xff] %v161_v41 }
  0xe6   :  { %v194_v42 = vpop.trf.xlu1 }
  0xe7   :  { %v162_v43 = vpop.trf.xlu0  ;;  %244 = vst [vmem:[#allocation2 + $0x158] sm:$0xff] %v194_v42 }
  0xe8   :  { %243 = vst [vmem:[#allocation2 + $0x150] sm:$0xff] %v162_v43 }
  0xea   :  { %v195_v44 = vpop.trf.xlu1 }
  0xeb   :  { %v163_v45 = vpop.trf.xlu0  ;;  %246 = vst [vmem:[#allocation2 + $0x168] sm:$0xff] %v195_v44 }
  0xec   :  { %245 = vst [vmem:[#allocation2 + $0x160] sm:$0xff] %v163_v45 }
  0xee   :  { %v196_v46 = vpop.trf.xlu1 }
  0xef   :  { %v164_v47 = vpop.trf.xlu0  ;;  %248 = vst [vmem:[#allocation2 + $0x178] sm:$0xff] %v196_v46 }
  0xf0   :  { %247 = vst [vmem:[#allocation2 + $0x170] sm:$0xff] %v164_v47 }
  0xf1   :  { %279 = shalt.err (!%p276_p4)
}
  0xf2   :  { %s280_s22 = scalar_lea.hbm %s510_s1, 6144 }
  0xf3   :  { %p281_p5 = scmp.ne.s32.totalorder %s510_s1, %s280_s22  ;;  %p284_p6 = scmp.lt.u32.totalorder %s280_s22, %s510_s1 }
  0xf5   :  { %p286_p7 = pnand %p284_p6, %p281_p5 }
  0xf7   :  { %289 = shalt.err (!%p286_p7)
}
  0xf8   :  { %s293_s27 = smov 256   ;;  %s294_s28 = smov 16  }
  0xf9   :  { %260 = dma.vmem_to_hbm [thread:$0]  %s255_s18, 6144, %s510_s1, [#allocation3], %s293_s27, %s293_s27, %s294_s28  }
  0xfa   :  { %290 = dma.done.wait [#allocation3], 6144  }
  0xfb   :  { %291 = vsyncadd [#allocation3], 4294961152 }
  0xfc   :  { %264 = vsyncpa [#allocation3], 1 }

</bundles_post_ra>
